<compile_context>
chip_gen: v7x
topology: tpu7x:2x2x1
jax: 0.10.0
libtpu: 0.0.40
codegen_flags: <defaults>
</compile_context>

<pallas_src>
import functools

import jax
import jax.numpy as jnp
from jax.experimental import pallas as pl
from jax.experimental.pallas import tpu as pltpu


def _round_up(n: int, m: int) -> int:
    return ((n + m - 1) // m) * m


def rnn_cell_kernel(xh_ref, w_ref, internal_ref, out_ref):
    """One fused MXU matmul + f32 add + ReLU, all lane-dense."""
    # (B_pad, K_pad) @ (K_pad, H_pad) -> (B_pad, H_pad), accumulate in f32.
    acc = jnp.dot(xh_ref[...], w_ref[...], preferred_element_type=jnp.float32)
    pre = acc + internal_ref[...].astype(jnp.float32)
    out_ref[...] = jnp.maximum(pre, 0.0).astype(out_ref.dtype)


@functools.partial(jax.jit, static_argnames=())
def rnn_cell_forward(x, internal, state, weight_ih, weight_hh):
    """Wrapper mirroring RNNCell.forward. Returns (hy, (hy,))."""
    hx = state[0]                               # (B, H)
    B, I = x.shape
    H = weight_ih.shape[0]

    K = I + H
    B_pad = _round_up(B, 8)
    K_pad = _round_up(K, 128)
    H_pad = _round_up(H, 128)

    # Fused, pre-transposed weight: [wih.T ; whh.T] -> (K, H), zero-padded to
    # (K_pad, H_pad). Weights are static; this is one-time layout plumbing
    # that fuses into surrounding XLA under jit.
    w_fused = jnp.concatenate([weight_ih.T, weight_hh.T], axis=0)
    w_fused = jnp.pad(w_fused, ((0, K_pad - K), (0, H_pad - H)))

    # Fused activations [x | hx] -> (B, K), zero-padded (zeros contribute 0
    # to the contraction, so numerics are unchanged).
    xh = jnp.concatenate([x, hx], axis=1)
    xh = jnp.pad(xh, ((0, B_pad - B), (0, K_pad - K)))

    internal_p = jnp.pad(internal, ((0, B_pad - B), (0, H_pad - H)))

    hy_pad = pl.pallas_call(
        rnn_cell_kernel,
        out_shape=jax.ShapeDtypeStruct((B_pad, H_pad), x.dtype),
        grid=(1,),
        in_specs=[
            pl.BlockSpec((B_pad, K_pad), lambda i: (0, 0)),
            pl.BlockSpec((K_pad, H_pad), lambda i: (0, 0)),
            pl.BlockSpec((B_pad, H_pad), lambda i: (0, 0)),
        ],
        out_specs=pl.BlockSpec((B_pad, H_pad), lambda i: (0, 0)),
        compiler_params=pltpu.CompilerParams(
            dimension_semantics=("arbitrary",)),
    )(xh, w_fused, internal_p)

    hy = hy_pad[:B, :H]
    return hy, (hy,)


if __name__ == "__main__":
    # Small shapes consistent with the module's forward.
    batch = 8
    input_size = 16
    hidden_size = 32

    key = jax.random.PRNGKey(0)
    k_wih, k_whh, k_x, k_int, k_h = jax.random.split(key, 5)

    # Deterministic parameter init matching torch.rand(...)*2*rootk - rootk
    rootk = float(jnp.sqrt(1.0 / hidden_size))
    weight_ih = jax.random.uniform(
        k_wih, (hidden_size, input_size), jnp.float32,
        minval=-rootk, maxval=rootk)
    weight_hh = jax.random.uniform(
        k_whh, (hidden_size, hidden_size), jnp.float32,
        minval=-rootk, maxval=rootk)

    x = jax.random.normal(k_x, (batch, input_size), jnp.float32)
    internal = jax.random.normal(k_int, (batch, hidden_size), jnp.float32)
    state = jax.random.normal(k_h, (1, batch, hidden_size), jnp.float32)

    hy, (hy_state,) = rnn_cell_forward(x, internal, state, weight_ih, weight_hh)
    jax.block_until_ready(hy)

    # Pure-JAX reference check.
    ref = jnp.maximum(x @ weight_ih.T + state[0] @ weight_hh.T + internal, 0.0)
    assert hy.shape == (batch, hidden_size)
    assert jnp.allclose(hy, ref, atol=1e-5, rtol=1e-5), "mismatch vs reference"
    assert jnp.array_equal(hy_state, hy)

    print("KERNEL_OK")
</pallas_src>

<mosaic_0001>
module attributes {stable_mosaic.version = 11 : i64} {
  func.func @rnn_cell_kernel(%arg0: i32, %arg1: memref<8x128xf32, #tpu.memory_space<vmem>>, %arg2: memref<128x128xf32, #tpu.memory_space<vmem>>, %arg3: memref<8x128xf32, #tpu.memory_space<vmem>>, %arg4: memref<8x128xf32, #tpu.memory_space<vmem>>) attributes {dimension_semantics = [#tpu.dimension_semantics<arbitrary>], iteration_bounds = array<i64: 1>, scalar_prefetch = 0 : i64, scratch_operands = 0 : i64, tpu.core_type = #tpu.core_type<tc>, window_params = [{pipeline_mode = #tpu.pipeline_mode<synchronous>, transform_indices = @transform_0, window_bounds = array<i64: 8, 128>}, {pipeline_mode = #tpu.pipeline_mode<synchronous>, transform_indices = @transform_1, window_bounds = array<i64: 128, 128>}, {pipeline_mode = #tpu.pipeline_mode<synchronous>, transform_indices = @transform_2, window_bounds = array<i64: 8, 128>}, {pipeline_mode = #tpu.pipeline_mode<synchronous>, transform_indices = @transform_3, window_bounds = array<i64: 8, 128>}]} {
    %c0 = arith.constant 0 : index
    %c0_0 = arith.constant 0 : index
    %0 = vector.load %arg1[%c0, %c0_0] : memref<8x128xf32, #tpu.memory_space<vmem>>, vector<8x128xf32>
    %c0_1 = arith.constant 0 : index
    %c0_2 = arith.constant 0 : index
    %1 = vector.load %arg2[%c0_1, %c0_2] : memref<128x128xf32, #tpu.memory_space<vmem>>, vector<128x128xf32>
    %cst = arith.constant dense<0.000000e+00> : vector<8x128xf32>
    %2 = tpu.matmul %0, %1, %cst {dimension_numbers = #tpu.dot_dimension_numbers<[1], [0], [0], [1], [0, 0, 1, 1], [], []>} : vector<8x128xf32>, vector<128x128xf32>, vector<8x128xf32> -> vector<8x128xf32>
    %c0_3 = arith.constant 0 : index
    %c0_4 = arith.constant 0 : index
    %3 = vector.load %arg3[%c0_3, %c0_4] : memref<8x128xf32, #tpu.memory_space<vmem>>, vector<8x128xf32>
    %4 = arith.addf %2, %3 : vector<8x128xf32>
    %cst_5 = arith.constant 0.000000e+00 : f32
    %5 = vector.broadcast %cst_5 : f32 to vector<8x128xf32>
    %6 = arith.maximumf %4, %5 : vector<8x128xf32>
    %c0_6 = arith.constant 0 : index
    %c0_7 = arith.constant 0 : index
    %7 = vector.load %arg4[%c0_6, %c0_7] : memref<8x128xf32, #tpu.memory_space<vmem>>, vector<8x128xf32>
    tpu.vector_store %arg4[%c0_6, %c0_7], %6 {strides = array<i32>} : memref<8x128xf32, #tpu.memory_space<vmem>>, vector<8x128xf32>,
    return
  }
  func.func @transform_0(%arg0: i32) -> (i32, i32) {
    %c0_i32 = arith.constant 0 : i32
    %c0_i32_0 = arith.constant 0 : i32
    %c0_i32_1 = arith.constant 0 : i32
    return %c0_i32, %c0_i32_0 : i32, i32
  }
  func.func @transform_1(%arg0: i32) -> (i32, i32) {
    %c0_i32 = arith.constant 0 : i32
    %c0_i32_0 = arith.constant 0 : i32
    %c0_i32_1 = arith.constant 0 : i32
    return %c0_i32, %c0_i32_0 : i32, i32
  }
  func.func @transform_2(%arg0: i32) -> (i32, i32) {
    %c0_i32 = arith.constant 0 : i32
    %c0_i32_0 = arith.constant 0 : i32
    %c0_i32_1 = arith.constant 0 : i32
    return %c0_i32, %c0_i32_0 : i32, i32
  }
  func.func @transform_3(%arg0: i32) -> (i32, i32) {
    %c0_i32 = arith.constant 0 : i32
    %c0_i32_0 = arith.constant 0 : i32
    %c0_i32_1 = arith.constant 0 : i32
    return %c0_i32, %c0_i32_0 : i32, i32
  }
}

</mosaic_0001>

<bundles_post_ra>
// kernel: rnn_cell_forward.1
= control target key start
LH: loop header
LB: loop body
LE: loop exit
PB: predicated region body
PF: predicated region fallthrough
CT: control target
= control target key end

     0   :  { %v187_v0 = vmov 0.0|0.0   ;;  %vm188_vm0 = vmmov 0   ;;  %v189_v4 = vmov 0.0   ;;  %s267_s1 = inlined_call_operand.vmem [shape: f32[128,128], index: 1, kind: input, shape index: {}]   ;;  %s268_s0 = inlined_call_operand.vmem [shape: f32[8,128], index: 0, kind: input, shape index: {}]   ;;  %s269_s2 = inlined_call_operand.vmem [shape: f32[8,128], index: 2, kind: input, shape index: {}]   ;;  %s270_s3 = inlined_call_operand.vmem [shape: f32[8,128], index: 3, kind: output, shape index: {}]  }
   0x1   :  { %160 = vmatprep.subr.bf16.mxu0 %v187_v0  ;;  %v15_v1 = vld [vmem:[%s267_s1] sm:$0xff]  ;;  %v16_v2 = vld [vmem:[%s267_s1 + $0x8] sm:$0xff]  ;;  %v17_v3 = vld [vmem:[%s267_s1 + $0x10] sm:$0xff]  ;;  %157 = vmatprep.mubr.msk.f32.mxu0 %vm188_vm0, %v189_v4 }
   0x2   :  { %v161_v5 = vpack.c.bf16 %v16_v2, %v15_v1  ;;  %v18_v6 = vld [vmem:[%s267_s1 + $0x18] sm:$0xff]  ;;  %v19_v8 = vld [vmem:[%s267_s1 + $0x20] sm:$0xff]  ;;  %v20_v9 = vld [vmem:[%s267_s1 + $0x28] sm:$0xff] }
   0x3   :  { %v164_v7 = vpack.c.bf16 %v18_v6, %v17_v3  ;;  %v167_v10 = vpack.c.bf16 %v20_v9, %v19_v8  ;;  %v21_v11 = vld [vmem:[%s267_s1 + $0x30] sm:$0xff]  ;;  %v22_v12 = vld [vmem:[%s267_s1 + $0x38] sm:$0xff]  ;;  %v23_v14 = vld [vmem:[%s267_s1 + $0x40] sm:$0xff] }
   0x4   :  { %162 = vmatpush3.bf16.msra.mxu0 %v161_v5  ;;  %v170_v13 = vpack.c.bf16 %v22_v12, %v21_v11  ;;  %v24_v15 = vld [vmem:[%s267_s1 + $0x48] sm:$0xff]  ;;  %v25_v17 = vld [vmem:[%s267_s1 + $0x50] sm:$0xff]  ;;  %v26_v18 = vld [vmem:[%s267_s1 + $0x58] sm:$0xff] }
   0x5   :  { %163 = vmatprep.subr.bf16.mxu0 %v187_v0  ;;  %v173_v16 = vpack.c.bf16 %v24_v15, %v23_v14  ;;  %v176_v19 = vpack.c.bf16 %v26_v18, %v25_v17  ;;  %v27_v20 = vld [vmem:[%s267_s1 + $0x60] sm:$0xff]  ;;  %v28_v21 = vld [vmem:[%s267_s1 + $0x68] sm:$0xff]  ;;  %v29_v23 = vld [vmem:[%s267_s1 + $0x70] sm:$0xff] }
   0x6   :  { %v179_v22 = vpack.c.bf16 %v28_v21, %v27_v20  ;;  %v30_v24 = vld [vmem:[%s267_s1 + $0x78] sm:$0xff]  ;;  %v14_v26 = vld [vmem:[%s268_s0] sm:$0xff] }
   0x7   :  { %v182_v25 = vpack.c.bf16 %v30_v24, %v29_v23  ;;  %v31_v27 = vld [vmem:[%s269_s2] sm:$0xff] }
   0x8   :  { %165 = vmatpush3.bf16.msra.mxu0 %v164_v7 }
   0x9   :  { %166 = vmatprep.subr.bf16.mxu0 %v187_v0 }
   0xc   :  { %168 = vmatpush3.bf16.msra.mxu0 %v167_v10 }
   0xd   :  { %169 = vmatprep.subr.bf16.mxu0 %v187_v0 }
  0x10   :  { %171 = vmatpush3.bf16.msra.mxu0 %v170_v13 }
  0x11   :  { %172 = vmatprep.subr.bf16.mxu0 %v187_v0 }
  0x14   :  { %174 = vmatpush3.bf16.msra.mxu0 %v173_v16 }
  0x15   :  { %175 = vmatprep.subr.bf16.mxu0 %v187_v0 }
  0x18   :  { %177 = vmatpush3.bf16.msra.mxu0 %v176_v19 }
  0x19   :  { %178 = vmatprep.subr.bf16.mxu0 %v187_v0 }
  0x1c   :  { %180 = vmatpush3.bf16.msra.mxu0 %v179_v22 }
  0x1d   :  { %181 = vmatprep.subr.bf16.mxu0 %v187_v0 }
  0x20   :  { %183 = vmatpush3.bf16.msra.mxu0 %v182_v25 }
  0x23   :  { %158 = vmatmul.mubr.f32.vlgmr.msra.gmra.mrb[0].mxu0 %v14_v26 }
  0xf6   :  { %v98_v28 = vpop.f32.mrb[0].mxu0 }
  0xf7   :  { %v99_v29 = vadd.f32 %v98_v28, %v31_v27  ;;  %v159_v30 = vpop.f32.mrb[1].mxu0 }
  0xf9   :  { %v102_v31 = vmax.f32 %v99_v29, 0.0 }
  0xfb   :  { %103 = vst [vmem:[%s270_s3] sm:$0xff] %v102_v31 }

</bundles_post_ra>
